<compile_context>
chip_gen: v7x
topology: tpu7x:2x2x1
jax: 0.10.0
libtpu: 0.0.40
codegen_flags: <defaults>
</compile_context>

<pallas_src>
import jax
import jax.numpy as jnp
from jax import lax
from jax.experimental import pallas as pl
from jax.experimental.pallas import tpu as pltpu


# ----------------------------------------------------------------------------
# Fused kernel: prediction (matmul) + per-sample nominal accuracy, per frame f.
# ----------------------------------------------------------------------------
def _fused_accuracy(x, w, label):
    """x: (B, D) f32, w: (F, N, D, C) f32, label: (B,) int -> (mean, std, per)."""
    F, N, D, C = w.shape
    B = x.shape[0]
    assert N <= 128, "per-frame accuracy row is lane-packed; need N <= 128"

    # Pack the sample axis into the matmul lane dimension: (F, D, N*C).
    w_packed = jnp.transpose(w, (0, 2, 1, 3)).reshape(F, D, N * C)
    label_col = label.reshape(B, 1).astype(jnp.int32)

    def kernel(x_ref, w_ref, label_ref, out_ref):
        # x_ref: (B, D); w_ref: (1, D, N*C); label_ref: (B, 1) int32
        # out_ref: (1, 8, 128) -- row 0, lanes [0:N] hold this frame's accuracies.
        pred = jnp.dot(x_ref[...], w_ref[0],
                       preferred_element_type=jnp.float32)        # (B, N*C)
        lab = label_ref[...]                                       # (B, 1)
        lane = lax.broadcasted_iota(jnp.int32, (1, 128), 1)
        col = lax.broadcasted_iota(jnp.int32, (B, C), 1)
        inv_b = jnp.float32(1.0 / B)
        acc_row = jnp.zeros((1, 128), jnp.float32)
        for n in range(N):                                         # static loop
            p = pred[:, n * C:(n + 1) * C]                         # (B, C)
            maxv = jnp.max(p, axis=1, keepdims=True)               # (B, 1)
            # torch.max(dim=1) returns the FIRST index attaining the max.
            idx = jnp.min(jnp.where(p == maxv, col, C),
                          axis=1, keepdims=True)                   # (B, 1)
            corr = (idx == lab).astype(jnp.float32)                # (B, 1)
            acc_n = jnp.sum(corr, axis=0, keepdims=True) * inv_b   # (1, 1)
            acc_row = jnp.where(lane == n, acc_n, acc_row)
        out_ref[0] = jnp.broadcast_to(acc_row, (8, 128))

    acc_tiles = pl.pallas_call(
        kernel,
        out_shape=jax.ShapeDtypeStruct((F, 8, 128), jnp.float32),
        grid_spec=pltpu.PrefetchScalarGridSpec(
            num_scalar_prefetch=0,
            grid=(F,),
            in_specs=[
                # x / label have constant block indices -> fetched once, not re-DMA'd.
                pl.BlockSpec((B, D), lambda f: (0, 0)),
                pl.BlockSpec((1, D, N * C), lambda f: (f, 0, 0)),
                pl.BlockSpec((B, 1), lambda f: (0, 0)),
            ],
            out_specs=pl.BlockSpec((1, 8, 128), lambda f: (f, 0, 0)),
        ),
        compiler_params=pltpu.CompilerParams(
            dimension_semantics=("parallel",),          # megacore over F on v7x
            vmem_limit_bytes=32 * 1024 * 1024,          # safe on v7x's 64 MiB VMEM
        ),
    )(x, w_packed, label_col)

    per = acc_tiles[:, 0, :N]                           # (F, N) per-slice accuracies
    # np.mean / np.std over the F*N accuracy list (population std, ddof=0).
    return jnp.mean(per), jnp.std(per), per


_fused_accuracy_jit = jax.jit(_fused_accuracy)


# ----------------------------------------------------------------------------
# Python-side module mirrors (glue only).
# ----------------------------------------------------------------------------
class SyntheticNN:
    """Deterministic stand-in for the network passed to Evaluator.forward.

    Holds the weights; the fused Pallas path reads .w directly so the
    (F, N, B, C) prediction never materializes in HBM. __call__ is a plain-JAX
    reference forward used only for validation.
    """

    def __init__(self, w):
        self.w = w
        self.Power = 1.234   # synthetic attributes read by Evaluator.forward
        self.Area = 5.678

    def __call__(self, x):
        return jnp.einsum("bd,fndc->fnbc", x, self.w)


class Args:
    def __init__(self, metric="acc"):
        self.metric = metric


class Evaluator:
    def __init__(self, args):
        self.sensing_margin = 0.01
        self.args = args

    def forward(self, nn, x, label):
        if self.args.metric != "acc":
            # TODO(synk): maa / acc_snn metrics not implemented in this script.
            raise NotImplementedError("only metric='acc' (nominal) supported")
        # Fused prediction + accuracy (prediction stays in VMEM scratch).
        acc, std, _ = _fused_accuracy_jit(x, nn.w, label)
        return {"acc": acc, "std": std, "power": nn.Power, "area": nn.Area}

    __call__ = forward


# ----------------------------------------------------------------------------
if __name__ == "__main__":
    # N*C = 128 -> lane-dense matmul output / unmasked stores.
    F, N, B, C, D = 2, 8, 8, 16, 32

    key = jax.random.PRNGKey(0)
    kx, kw, kl = jax.random.split(key, 3)
    x = jax.random.normal(kx, (B, D), dtype=jnp.float32)
    w = jax.random.normal(kw, (F, N, D, C), dtype=jnp.float32) * 0.1
    label = jax.random.randint(kl, (B,), 0, C, dtype=jnp.int32)

    nn_mod = SyntheticNN(w)
    evaluator = Evaluator(Args(metric="acc"))

    out = evaluator(nn_mod, x, label)
    acc = jax.block_until_ready(out["acc"])
    std = jax.block_until_ready(out["std"])

    # sanity check against a pure-JAX reference of the PyTorch semantics
    pred_ref = nn_mod(x)                                   # (F, N, B, C)
    per_ref = jnp.mean(
        (jnp.argmax(pred_ref, axis=-1) == label[None, None, :]).astype(jnp.float32),
        axis=-1,
    )
    assert jnp.allclose(acc, jnp.mean(per_ref), atol=1e-6)
    assert jnp.allclose(std, jnp.std(per_ref), atol=1e-6)

    print("KERNEL_OK")
</pallas_src>

<mosaic_0001>
module attributes {stable_mosaic.version = 11 : i64} {
  func.func @kernel(%arg0: i32, %arg1: memref<8x32xf32, #tpu.memory_space<vmem>>, %arg2: memref<1x32x128xf32, #tpu.memory_space<vmem>>, %arg3: memref<8x1xi32, #tpu.memory_space<vmem>>, %arg4: memref<1x8x128xf32, #tpu.memory_space<vmem>>) attributes {dimension_semantics = [#tpu.dimension_semantics<parallel>], iteration_bounds = array<i64: 2>, scalar_prefetch = 0 : i64, scratch_operands = 0 : i64, tpu.core_type = #tpu.core_type<tc>, window_params = [{pipeline_mode = #tpu.pipeline_mode<synchronous>, transform_indices = @transform_0, window_bounds = array<i64: 8, 32>}, {transform_indices = @transform_1, window_bounds = array<i64: 1, 32, 128>}, {pipeline_mode = #tpu.pipeline_mode<synchronous>, transform_indices = @transform_2, window_bounds = array<i64: 8, 1>}, {transform_indices = @transform_3, window_bounds = array<i64: 1, 8, 128>}]} {
    %c0 = arith.constant 0 : index
    %c0_0 = arith.constant 0 : index
    %0 = vector.load %arg1[%c0, %c0_0] : memref<8x32xf32, #tpu.memory_space<vmem>>, vector<8x32xf32>
    %c0_1 = arith.constant 0 : index
    %c0_2 = arith.constant 0 : index
    %c0_3 = arith.constant 0 : index
    %1 = vector.load %arg2[%c0_1, %c0_2, %c0_3] : memref<1x32x128xf32, #tpu.memory_space<vmem>>, vector<1x32x128xf32>
    %2 = vector.shape_cast %1 : vector<1x32x128xf32> to vector<32x128xf32>
    %cst = arith.constant dense<0.000000e+00> : vector<8x128xf32>
    %3 = tpu.matmul %0, %2, %cst {dimension_numbers = #tpu.dot_dimension_numbers<[1], [0], [0], [1], [0, 0, 1, 1], [], []>} : vector<8x32xf32>, vector<32x128xf32>, vector<8x128xf32> -> vector<8x128xf32>
    %c0_4 = arith.constant 0 : index
    %c0_5 = arith.constant 0 : index
    %4 = vector.load %arg3[%c0_4, %c0_5] : memref<8x1xi32, #tpu.memory_space<vmem>>, vector<8x1xi32>
    %5 = tpu.iota {dimensions = array<i32: 1>} : vector<1x128xi32>
    %6 = tpu.iota {dimensions = array<i32: 1>} : vector<8x16xi32>
    %cst_6 = arith.constant 0.000000e+00 : f32
    %7 = vector.broadcast %cst_6 : f32 to vector<1x128xf32>
    %8 = vector.extract_strided_slice %3 {offsets = [0, 0], sizes = [8, 16], strides = [1, 1]} : vector<8x128xf32> to vector<8x16xf32>
    %cst_7 = arith.constant dense<0xFF800000> : vector<8xf32>
    %9 = vector.multi_reduction <maximumf>, %8, %cst_7 [1] : vector<8x16xf32> to vector<8xf32>
    %10 = vector.shape_cast %9 : vector<8xf32> to vector<8x1xf32>
    %11 = vector.broadcast %10 : vector<8x1xf32> to vector<8x16xf32>
    %12 = arith.cmpf oeq, %8, %11 : vector<8x16xf32>
    %c16_i32 = arith.constant 16 : i32
    %13 = vector.broadcast %c16_i32 : i32 to vector<8x16xi32>
    %14 = arith.select %12, %6, %13 : vector<8x16xi1>, vector<8x16xi32>
    %cst_8 = arith.constant dense<2147483647> : vector<8xi32>
    %15 = vector.multi_reduction <minsi>, %14, %cst_8 [1] : vector<8x16xi32> to vector<8xi32>
    %16 = vector.shape_cast %15 : vector<8xi32> to vector<8x1xi32>
    %17 = arith.cmpi eq, %16, %4 : vector<8x1xi32>
    %18 = arith.extui %17 : vector<8x1xi1> to vector<8x1xi32>
    %19 = arith.sitofp %18 : vector<8x1xi32> to vector<8x1xf32>
    %cst_9 = arith.constant dense<0.000000e+00> : vector<1xf32>
    %20 = vector.multi_reduction <add>, %19, %cst_9 [0] : vector<8x1xf32> to vector<1xf32>
    %21 = vector.shape_cast %20 : vector<1xf32> to vector<1x1xf32>
    %cst_10 = arith.constant 1.250000e-01 : f32
    %22 = vector.broadcast %cst_10 : f32 to vector<1x1xf32>
    %23 = arith.mulf %21, %22 : vector<1x1xf32>
    %c0_i32 = arith.constant 0 : i32
    %24 = vector.broadcast %c0_i32 : i32 to vector<1x128xi32>
    %25 = arith.cmpi eq, %5, %24 : vector<1x128xi32>
    %26 = vector.shape_cast %23 : vector<1x1xf32> to vector<1x1xf32>
    %27 = vector.broadcast %26 : vector<1x1xf32> to vector<1x128xf32>
    %28 = arith.select %25, %27, %7 : vector<1x128xi1>, vector<1x128xf32>
    %29 = vector.extract_strided_slice %3 {offsets = [0, 16], sizes = [8, 16], strides = [1, 1]} : vector<8x128xf32> to vector<8x16xf32>
    %cst_11 = arith.constant dense<0xFF800000> : vector<8xf32>
    %30 = vector.multi_reduction <maximumf>, %29, %cst_11 [1] : vector<8x16xf32> to vector<8xf32>
    %31 = vector.shape_cast %30 : vector<8xf32> to vector<8x1xf32>
    %32 = vector.broadcast %31 : vector<8x1xf32> to vector<8x16xf32>
    %33 = arith.cmpf oeq, %29, %32 : vector<8x16xf32>
    %c16_i32_12 = arith.constant 16 : i32
    %34 = vector.broadcast %c16_i32_12 : i32 to vector<8x16xi32>
    %35 = arith.select %33, %6, %34 : vector<8x16xi1>, vector<8x16xi32>
    %cst_13 = arith.constant dense<2147483647> : vector<8xi32>
    %36 = vector.multi_reduction <minsi>, %35, %cst_13 [1] : vector<8x16xi32> to vector<8xi32>
    %37 = vector.shape_cast %36 : vector<8xi32> to vector<8x1xi32>
    %38 = arith.cmpi eq, %37, %4 : vector<8x1xi32>
    %39 = arith.extui %38 : vector<8x1xi1> to vector<8x1xi32>
    %40 = arith.sitofp %39 : vector<8x1xi32> to vector<8x1xf32>
    %cst_14 = arith.constant dense<0.000000e+00> : vector<1xf32>
    %41 = vector.multi_reduction <add>, %40, %cst_14 [0] : vector<8x1xf32> to vector<1xf32>
    %42 = vector.shape_cast %41 : vector<1xf32> to vector<1x1xf32>
    %cst_15 = arith.constant 1.250000e-01 : f32
    %43 = vector.broadcast %cst_15 : f32 to vector<1x1xf32>
    %44 = arith.mulf %42, %43 : vector<1x1xf32>
    %c1_i32 = arith.constant 1 : i32
    %45 = vector.broadcast %c1_i32 : i32 to vector<1x128xi32>
    %46 = arith.cmpi eq, %5, %45 : vector<1x128xi32>
    %47 = vector.shape_cast %44 : vector<1x1xf32> to vector<1x1xf32>
    %48 = vector.broadcast %47 : vector<1x1xf32> to vector<1x128xf32>
    %49 = arith.select %46, %48, %28 : vector<1x128xi1>, vector<1x128xf32>
    %50 = vector.extract_strided_slice %3 {offsets = [0, 32], sizes = [8, 16], strides = [1, 1]} : vector<8x128xf32> to vector<8x16xf32>
    %cst_16 = arith.constant dense<0xFF800000> : vector<8xf32>
    %51 = vector.multi_reduction <maximumf>, %50, %cst_16 [1] : vector<8x16xf32> to vector<8xf32>
    %52 = vector.shape_cast %51 : vector<8xf32> to vector<8x1xf32>
    %53 = vector.broadcast %52 : vector<8x1xf32> to vector<8x16xf32>
    %54 = arith.cmpf oeq, %50, %53 : vector<8x16xf32>
    %c16_i32_17 = arith.constant 16 : i32
    %55 = vector.broadcast %c16_i32_17 : i32 to vector<8x16xi32>
    %56 = arith.select %54, %6, %55 : vector<8x16xi1>, vector<8x16xi32>
    %cst_18 = arith.constant dense<2147483647> : vector<8xi32>
    %57 = vector.multi_reduction <minsi>, %56, %cst_18 [1] : vector<8x16xi32> to vector<8xi32>
    %58 = vector.shape_cast %57 : vector<8xi32> to vector<8x1xi32>
    %59 = arith.cmpi eq, %58, %4 : vector<8x1xi32>
    %60 = arith.extui %59 : vector<8x1xi1> to vector<8x1xi32>
    %61 = arith.sitofp %60 : vector<8x1xi32> to vector<8x1xf32>
    %cst_19 = arith.constant dense<0.000000e+00> : vector<1xf32>
    %62 = vector.multi_reduction <add>, %61, %cst_19 [0] : vector<8x1xf32> to vector<1xf32>
    %63 = vector.shape_cast %62 : vector<1xf32> to vector<1x1xf32>
    %cst_20 = arith.constant 1.250000e-01 : f32
    %64 = vector.broadcast %cst_20 : f32 to vector<1x1xf32>
    %65 = arith.mulf %63, %64 : vector<1x1xf32>
    %c2_i32 = arith.constant 2 : i32
    %66 = vector.broadcast %c2_i32 : i32 to vector<1x128xi32>
    %67 = arith.cmpi eq, %5, %66 : vector<1x128xi32>
    %68 = vector.shape_cast %65 : vector<1x1xf32> to vector<1x1xf32>
    %69 = vector.broadcast %68 : vector<1x1xf32> to vector<1x128xf32>
    %70 = arith.select %67, %69, %49 : vector<1x128xi1>, vector<1x128xf32>
    %71 = vector.extract_strided_slice %3 {offsets = [0, 48], sizes = [8, 16], strides = [1, 1]} : vector<8x128xf32> to vector<8x16xf32>
    %cst_21 = arith.constant dense<0xFF800000> : vector<8xf32>
    %72 = vector.multi_reduction <maximumf>, %71, %cst_21 [1] : vector<8x16xf32> to vector<8xf32>
    %73 = vector.shape_cast %72 : vector<8xf32> to vector<8x1xf32>
    %74 = vector.broadcast %73 : vector<8x1xf32> to vector<8x16xf32>
    %75 = arith.cmpf oeq, %71, %74 : vector<8x16xf32>
    %c16_i32_22 = arith.constant 16 : i32
    %76 = vector.broadcast %c16_i32_22 : i32 to vector<8x16xi32>
    %77 = arith.select %75, %6, %76 : vector<8x16xi1>, vector<8x16xi32>
    %cst_23 = arith.constant dense<2147483647> : vector<8xi32>
    %78 = vector.multi_reduction <minsi>, %77, %cst_23 [1] : vector<8x16xi32> to vector<8xi32>
    %79 = vector.shape_cast %78 : vector<8xi32> to vector<8x1xi32>
    %80 = arith.cmpi eq, %79, %4 : vector<8x1xi32>
    %81 = arith.extui %80 : vector<8x1xi1> to vector<8x1xi32>
    %82 = arith.sitofp %81 : vector<8x1xi32> to vector<8x1xf32>
    %cst_24 = arith.constant dense<0.000000e+00> : vector<1xf32>
    %83 = vector.multi_reduction <add>, %82, %cst_24 [0] : vector<8x1xf32> to vector<1xf32>
    %84 = vector.shape_cast %83 : vector<1xf32> to vector<1x1xf32>
    %cst_25 = arith.constant 1.250000e-01 : f32
    %85 = vector.broadcast %cst_25 : f32 to vector<1x1xf32>
    %86 = arith.mulf %84, %85 : vector<1x1xf32>
    %c3_i32 = arith.constant 3 : i32
    %87 = vector.broadcast %c3_i32 : i32 to vector<1x128xi32>
    %88 = arith.cmpi eq, %5, %87 : vector<1x128xi32>
    %89 = vector.shape_cast %86 : vector<1x1xf32> to vector<1x1xf32>
    %90 = vector.broadcast %89 : vector<1x1xf32> to vector<1x128xf32>
    %91 = arith.select %88, %90, %70 : vector<1x128xi1>, vector<1x128xf32>
    %92 = vector.extract_strided_slice %3 {offsets = [0, 64], sizes = [8, 16], strides = [1, 1]} : vector<8x128xf32> to vector<8x16xf32>
    %cst_26 = arith.constant dense<0xFF800000> : vector<8xf32>
    %93 = vector.multi_reduction <maximumf>, %92, %cst_26 [1] : vector<8x16xf32> to vector<8xf32>
    %94 = vector.shape_cast %93 : vector<8xf32> to vector<8x1xf32>
    %95 = vector.broadcast %94 : vector<8x1xf32> to vector<8x16xf32>
    %96 = arith.cmpf oeq, %92, %95 : vector<8x16xf32>
    %c16_i32_27 = arith.constant 16 : i32
    %97 = vector.broadcast %c16_i32_27 : i32 to vector<8x16xi32>
    %98 = arith.select %96, %6, %97 : vector<8x16xi1>, vector<8x16xi32>
    %cst_28 = arith.constant dense<2147483647> : vector<8xi32>
    %99 = vector.multi_reduction <minsi>, %98, %cst_28 [1] : vector<8x16xi32> to vector<8xi32>
    %100 = vector.shape_cast %99 : vector<8xi32> to vector<8x1xi32>
    %101 = arith.cmpi eq, %100, %4 : vector<8x1xi32>
    %102 = arith.extui %101 : vector<8x1xi1> to vector<8x1xi32>
    %103 = arith.sitofp %102 : vector<8x1xi32> to vector<8x1xf32>
    %cst_29 = arith.constant dense<0.000000e+00> : vector<1xf32>
    %104 = vector.multi_reduction <add>, %103, %cst_29 [0] : vector<8x1xf32> to vector<1xf32>
    %105 = vector.shape_cast %104 : vector<1xf32> to vector<1x1xf32>
    %cst_30 = arith.constant 1.250000e-01 : f32
    %106 = vector.broadcast %cst_30 : f32 to vector<1x1xf32>
    %107 = arith.mulf %105, %106 : vector<1x1xf32>
    %c4_i32 = arith.constant 4 : i32
    %108 = vector.broadcast %c4_i32 : i32 to vector<1x128xi32>
    %109 = arith.cmpi eq, %5, %108 : vector<1x128xi32>
    %110 = vector.shape_cast %107 : vector<1x1xf32> to vector<1x1xf32>
    %111 = vector.broadcast %110 : vector<1x1xf32> to vector<1x128xf32>
    %112 = arith.select %109, %111, %91 : vector<1x128xi1>, vector<1x128xf32>
    %113 = vector.extract_strided_slice %3 {offsets = [0, 80], sizes = [8, 16], strides = [1, 1]} : vector<8x128xf32> to vector<8x16xf32>
    %cst_31 = arith.constant dense<0xFF800000> : vector<8xf32>
    %114 = vector.multi_reduction <maximumf>, %113, %cst_31 [1] : vector<8x16xf32> to vector<8xf32>
    %115 = vector.shape_cast %114 : vector<8xf32> to vector<8x1xf32>
    %116 = vector.broadcast %115 : vector<8x1xf32> to vector<8x16xf32>
    %117 = arith.cmpf oeq, %113, %116 : vector<8x16xf32>
    %c16_i32_32 = arith.constant 16 : i32
    %118 = vector.broadcast %c16_i32_32 : i32 to vector<8x16xi32>
    %119 = arith.select %117, %6, %118 : vector<8x16xi1>, vector<8x16xi32>
    %cst_33 = arith.constant dense<2147483647> : vector<8xi32>
    %120 = vector.multi_reduction <minsi>, %119, %cst_33 [1] : vector<8x16xi32> to vector<8xi32>
    %121 = vector.shape_cast %120 : vector<8xi32> to vector<8x1xi32>
    %122 = arith.cmpi eq, %121, %4 : vector<8x1xi32>
    %123 = arith.extui %122 : vector<8x1xi1> to vector<8x1xi32>
    %124 = arith.sitofp %123 : vector<8x1xi32> to vector<8x1xf32>
    %cst_34 = arith.constant dense<0.000000e+00> : vector<1xf32>
    %125 = vector.multi_reduction <add>, %124, %cst_34 [0] : vector<8x1xf32> to vector<1xf32>
    %126 = vector.shape_cast %125 : vector<1xf32> to vector<1x1xf32>
    %cst_35 = arith.constant 1.250000e-01 : f32
    %127 = vector.broadcast %cst_35 : f32 to vector<1x1xf32>
    %128 = arith.mulf %126, %127 : vector<1x1xf32>
    %c5_i32 = arith.constant 5 : i32
    %129 = vector.broadcast %c5_i32 : i32 to vector<1x128xi32>
    %130 = arith.cmpi eq, %5, %129 : vector<1x128xi32>
    %131 = vector.shape_cast %128 : vector<1x1xf32> to vector<1x1xf32>
    %132 = vector.broadcast %131 : vector<1x1xf32> to vector<1x128xf32>
    %133 = arith.select %130, %132, %112 : vector<1x128xi1>, vector<1x128xf32>
    %134 = vector.extract_strided_slice %3 {offsets = [0, 96], sizes = [8, 16], strides = [1, 1]} : vector<8x128xf32> to vector<8x16xf32>
    %cst_36 = arith.constant dense<0xFF800000> : vector<8xf32>
    %135 = vector.multi_reduction <maximumf>, %134, %cst_36 [1] : vector<8x16xf32> to vector<8xf32>
    %136 = vector.shape_cast %135 : vector<8xf32> to vector<8x1xf32>
    %137 = vector.broadcast %136 : vector<8x1xf32> to vector<8x16xf32>
    %138 = arith.cmpf oeq, %134, %137 : vector<8x16xf32>
    %c16_i32_37 = arith.constant 16 : i32
    %139 = vector.broadcast %c16_i32_37 : i32 to vector<8x16xi32>
    %140 = arith.select %138, %6, %139 : vector<8x16xi1>, vector<8x16xi32>
    %cst_38 = arith.constant dense<2147483647> : vector<8xi32>
    %141 = vector.multi_reduction <minsi>, %140, %cst_38 [1] : vector<8x16xi32> to vector<8xi32>
    %142 = vector.shape_cast %141 : vector<8xi32> to vector<8x1xi32>
    %143 = arith.cmpi eq, %142, %4 : vector<8x1xi32>
    %144 = arith.extui %143 : vector<8x1xi1> to vector<8x1xi32>
    %145 = arith.sitofp %144 : vector<8x1xi32> to vector<8x1xf32>
    %cst_39 = arith.constant dense<0.000000e+00> : vector<1xf32>
    %146 = vector.multi_reduction <add>, %145, %cst_39 [0] : vector<8x1xf32> to vector<1xf32>
    %147 = vector.shape_cast %146 : vector<1xf32> to vector<1x1xf32>
    %cst_40 = arith.constant 1.250000e-01 : f32
    %148 = vector.broadcast %cst_40 : f32 to vector<1x1xf32>
    %149 = arith.mulf %147, %148 : vector<1x1xf32>
    %c6_i32 = arith.constant 6 : i32
    %150 = vector.broadcast %c6_i32 : i32 to vector<1x128xi32>
    %151 = arith.cmpi eq, %5, %150 : vector<1x128xi32>
    %152 = vector.shape_cast %149 : vector<1x1xf32> to vector<1x1xf32>
    %153 = vector.broadcast %152 : vector<1x1xf32> to vector<1x128xf32>
    %154 = arith.select %151, %153, %133 : vector<1x128xi1>, vector<1x128xf32>
    %155 = vector.extract_strided_slice %3 {offsets = [0, 112], sizes = [8, 16], strides = [1, 1]} : vector<8x128xf32> to vector<8x16xf32>
    %cst_41 = arith.constant dense<0xFF800000> : vector<8xf32>
    %156 = vector.multi_reduction <maximumf>, %155, %cst_41 [1] : vector<8x16xf32> to vector<8xf32>
    %157 = vector.shape_cast %156 : vector<8xf32> to vector<8x1xf32>
    %158 = vector.broadcast %157 : vector<8x1xf32> to vector<8x16xf32>
    %159 = arith.cmpf oeq, %155, %158 : vector<8x16xf32>
    %c16_i32_42 = arith.constant 16 : i32
    %160 = vector.broadcast %c16_i32_42 : i32 to vector<8x16xi32>
    %161 = arith.select %159, %6, %160 : vector<8x16xi1>, vector<8x16xi32>
    %cst_43 = arith.constant dense<2147483647> : vector<8xi32>
    %162 = vector.multi_reduction <minsi>, %161, %cst_43 [1] : vector<8x16xi32> to vector<8xi32>
    %163 = vector.shape_cast %162 : vector<8xi32> to vector<8x1xi32>
    %164 = arith.cmpi eq, %163, %4 : vector<8x1xi32>
    %165 = arith.extui %164 : vector<8x1xi1> to vector<8x1xi32>
    %166 = arith.sitofp %165 : vector<8x1xi32> to vector<8x1xf32>
    %cst_44 = arith.constant dense<0.000000e+00> : vector<1xf32>
    %167 = vector.multi_reduction <add>, %166, %cst_44 [0] : vector<8x1xf32> to vector<1xf32>
    %168 = vector.shape_cast %167 : vector<1xf32> to vector<1x1xf32>
    %cst_45 = arith.constant 1.250000e-01 : f32
    %169 = vector.broadcast %cst_45 : f32 to vector<1x1xf32>
    %170 = arith.mulf %168, %169 : vector<1x1xf32>
    %c7_i32 = arith.constant 7 : i32
    %171 = vector.broadcast %c7_i32 : i32 to vector<1x128xi32>
    %172 = arith.cmpi eq, %5, %171 : vector<1x128xi32>
    %173 = vector.shape_cast %170 : vector<1x1xf32> to vector<1x1xf32>
    %174 = vector.broadcast %173 : vector<1x1xf32> to vector<1x128xf32>
    %175 = arith.select %172, %174, %154 : vector<1x128xi1>, vector<1x128xf32>
    %176 = vector.shape_cast %175 : vector<1x128xf32> to vector<1x128xf32>
    %177 = vector.broadcast %176 : vector<1x128xf32> to vector<8x128xf32>
    %c0_46 = arith.constant 0 : index
    %c0_47 = arith.constant 0 : index
    %c0_48 = arith.constant 0 : index
    %178 = vector.load %arg4[%c0_46, %c0_47, %c0_48] : memref<1x8x128xf32, #tpu.memory_space<vmem>>, vector<1x8x128xf32>
    %179 = vector.shape_cast %178 : vector<1x8x128xf32> to vector<8x128xf32>
    %180 = vector.shape_cast %177 : vector<8x128xf32> to vector<1x8x128xf32>
    tpu.vector_store %arg4[%c0_46, %c0_47, %c0_48], %180 {strides = array<i32>} : memref<1x8x128xf32, #tpu.memory_space<vmem>>, vector<1x8x128xf32>,
    return
  }
  func.func @transform_0(%arg0: i32) -> (i32, i32) {
    %c0_i32 = arith.constant 0 : i32
    %c0_i32_0 = arith.constant 0 : i32
    %c0_i32_1 = arith.constant 0 : i32
    return %c0_i32, %c0_i32_0 : i32, i32
  }
  func.func @transform_1(%arg0: i32) -> (i32, i32, i32) {
    %c0_i32 = arith.constant 0 : i32
    %c0_i32_0 = arith.constant 0 : i32
    %c0_i32_1 = arith.constant 0 : i32
    return %arg0, %c0_i32, %c0_i32_0 : i32, i32, i32
  }
  func.func @transform_2(%arg0: i32) -> (i32, i32) {
    %c0_i32 = arith.constant 0 : i32
    %c0_i32_0 = arith.constant 0 : i32
    %c0_i32_1 = arith.constant 0 : i32
    return %c0_i32, %c0_i32_0 : i32, i32
  }
  func.func @transform_3(%arg0: i32) -> (i32, i32, i32) {
    %c0_i32 = arith.constant 0 : i32
    %c0_i32_0 = arith.constant 0 : i32
    %c0_i32_1 = arith.constant 0 : i32
    return %arg0, %c0_i32, %c0_i32_0 : i32, i32, i32
  }
}

</mosaic_0001>

<bundles_post_ra>
// kernel: _fused_accuracy.1
= control target key start
LH: loop header
LB: loop body
LE: loop exit
PB: predicated region body
PF: predicated region fallthrough
CT: control target
= control target key end

     0   :  { %s734_s12 = smov 0   ;;  %s872_s0 = inlined_call_operand.vmem [shape: f32[8,32], index: 0, kind: input, shape index: {}]   ;;  %s873_s1 = inlined_call_operand.vmem [shape: f32[2,32,128], index: 1, kind: input, shape index: {}]   ;;  %s874_s2 = inlined_call_operand.vmem [shape: s32[8,1], index: 2, kind: input, shape index: {}]   ;;  %s875_s3 = inlined_call_operand.vmem [shape: f32[2,8,128], index: 3, kind: output, shape index: {}]  }
   0x1 LB: > { %s632_s13 = sadd.s32 4294967295, %s701_s12   ;;  %p636_p0 = scmp.ge.s32.totalorder %s701_s12, 1  ;;  %s701_s12 = sphi %s734_s12, %s13_s12  }
   0x2   : > { %p137_p1 = scmp.lt.s32.totalorder %s701_s12, 3 }
   0x4   : > { %p138_p2 = pnand %p636_p0, %p137_p1 }
   0x5   : > { %p160_p3 = scmp.lt.s32.totalorder (!%p138_p2), %s632_s13, 1  ;;  %v703_v0 = vmov (!%p138_p2), 0.0|0.0   ;;  %vm704_vm0 = vmmov (!%p138_p2), 0   ;;  %v705_v1 = vmov (!%p138_p2), 0.0   ;;  %v249_v2 = vlaneseq (!%p138_p2)  ;;  %s706_s18 = smov (!%p138_p2), 16   ;;  %v169_v10 = vld [vmem:[%s872_s0] sm:$0xff] (!%p138_p2) }
   0x6   : > { %141 = sbr.rel (%p138_p2) target bundleno = 985 (0x3d9), region = 32  ;;  %668 = vmatprep.subr.bf16.mxu0 (!%p138_p2), %v703_v0  ;;  %665 = vmatprep.mubr.msk.f32.mxu0 (!%p138_p2), %vm704_vm0, %v705_v1  ;;  %s707_s19 = smov (!%p138_p2), 64   ;;  %vm174_vm1 = vcmask (!%p138_p2), 261120   ;;  %vm414_vm2 = vcmask (!%p138_p2), 654848   ;;  %vm251_vm3 = vcmask (!%p138_p2), 130048   ;;  %vm496_vm4 = vcmask (!%p138_p2), 917248  }
   0x7   : > { %v745_v3 = vand.u32 (!%p138_p2), 127, %v249_v2  ;;  %s708_s20 = smov (!%p138_p2), 32   ;;  %s709_s23 = smov (!%p138_p2), 48   ;;  %vm291_vm5 = vcmask (!%p138_p2), 261248   ;;  %vm537_vm6 = vcmask (!%p138_p2), 1048448   ;;  %vm332_vm7 = vcmask (!%p138_p2), 392448  }
   0x8   : > { %vm373_vm8 = vcmask (!%p138_p2), 523648   ;;  %vm455_vm9 = vcmask (!%p138_p2), 786048   ;;  %s710_s24 = smov (!%p138_p2), 96   ;;  %s711_s25 = smov (!%p138_p2), 112  }
   0x9   : > { %296 = vrot.lane.b32.xlu0 (!%p138_p2), %v745_v3, %s706_s18  ;;  %419 = vrot.lane.b32.xlu1 (!%p138_p2), %v745_v3, %s707_s19  ;;  %s712_s26 = smov (!%p138_p2), 80  }
   0xd   : > { %s877_s13 = smov (!%p160_p3, %s632_s13), 1  ;;  %337 = vrot.lane.b32.xlu0 %v745_v3, %s708_s20 }
   0xe   : > { %s651_s14 = sshll.u32 %s877_s13, 5  ;;  %s639_s29 = sshll.u32 %s877_s13, 3 }
   0xf   : > { %s164_s17 = scalar_lea.vmem %s873_s1, %s651_s14  ;;  %s168_s5 = scalar_lea.vmem %s875_s3, %s639_s29 }
  0x10   : > { %v170_v4 = vld [vmem:[%s164_s17] sm:$0xff]  ;;  %v171_v5 = vld [vmem:[%s164_s17 + $0x8] sm:$0xff]  ;;  %v172_v6 = vld [vmem:[%s164_s17 + $0x10] sm:$0xff] }
  0x11   : > { %v669_v7 = vpack.c.bf16 %v171_v5, %v170_v4  ;;  %v173_v8 = vld [vmem:[%s164_s17 + $0x18] sm:$0xff]  ;;  %378 = vrot.lane.b32.xlu0 %v745_v3, %s709_s23 }
  0x12   : > { %v672_v9 = vpack.c.bf16 %v173_v8, %v172_v6 }
  0x13   : > { %670 = vmatpush3.bf16.msra.mxu0 %v669_v7 }
  0x14   : > { %671 = vmatprep.subr.bf16.mxu0 %v703_v0 }
  0x17   : > { %673 = vmatpush3.bf16.msra.mxu0 %v672_v9 }
  0x1a   : > { %666 = vmatmul.mubr.msk.f32.vlgmr.msra.gmra.mrb[0].mxu0 %vm174_vm1, %v169_v10 }
  0x7b   : > { %v297_v21 = vpop.permute.xlu0 %296  ;;  %v420_v24 = vpop.permute.xlu1 %419 }
  0x7f   : > { %v338_v22 = vpop.permute.xlu0 %337 }
  0x83   : > { %v379_v23 = vpop.permute.xlu0 %378 }
  0xed   : > { %v758_v11 = vpop.f32.mrb[0].mxu0 }
  0xee   : > { %v667_v12 = vpop.f32.mrb[1].mxu0  ;;  %v415_v13 = vsel %vm414_vm2, %v758_v11, -inf  ;;  %v252_v14 = vsel %vm251_vm3, %v758_v11, -inf  ;;  %v497_v15 = vsel %vm496_vm4, %v758_v11, -inf  ;;  %v292_v16 = vsel %vm291_vm5, %v758_v11, -inf }
  0xef   : > { %416 = vmax.xlane.f32.xlu1 %v415_v13  ;;  %253 = vmax.xlane.f32.xlu0 %v252_v14  ;;  %v538_v17 = vsel %vm537_vm6, %v758_v11, -inf  ;;  %v333_v18 = vsel %vm332_vm7, %v758_v11, -inf  ;;  %v374_v19 = vsel %vm373_vm8, %v758_v11, -inf  ;;  %v456_v20 = vsel %vm455_vm9, %v758_v11, -inf }
  0xf3   : > { %498 = vmax.xlane.f32.xlu1 %v497_v15  ;;  %293 = vmax.xlane.f32.xlu0 %v292_v16 }
  0xf7   : > { %539 = vmax.xlane.f32.xlu1 %v538_v17  ;;  %334 = vmax.xlane.f32.xlu0 %v333_v18 }
  0xfb   : > { %375 = vmax.xlane.f32.xlu0 %v374_v19 }
  0xff   : > { %457 = vmax.xlane.f32.xlu0 %v456_v20 }
 0x108   : > { %501 = vrot.lane.b32.xlu1 %v745_v3, %s710_s24 }
 0x10c   : > { %542 = vrot.lane.b32.xlu1 %v745_v3, %s711_s25 }
 0x17c   : > { %v254_v25 = vpop.xlane.xlu0 %253  ;;  %v417_v30 = vpop.xlane.xlu1 %416 }
 0x17d   : > { %vm255_vm10 = vcmp.eq.f32.partialorder %v758_v11, %v254_v25  ;;  %vm418_vm12 = vcmp.eq.f32.partialorder %v758_v11, %v417_v30 }
 0x17e   : > { %v256_v26 = vsel %vm255_vm10, %v745_v3, 16  ;;  %v421_v39 = vsel %vm418_vm12, %v420_v24, 16  ;;  %vm275_vm10 = vcmask 7168  }
 0x17f   : > { %v781_v27 = vsel %vm251_vm3, %v256_v26, 2147483647  ;;  %v422_v44 = vsel %vm414_vm2, %v421_v39, 2147483647  ;;  %v713_v26 = vmov 0  }
 0x180   : > { %v294_v28 = vpop.xlane.xlu0 %293  ;;  %v259_v29 = vshra.s32 %v781_v27, 16  ;;  %v424_v48 = vshra.s32 %v422_v44, 16  ;;  %v499_v50 = vpop.xlane.xlu1 %498  ;;  %v258_v18 = vand.u32 65535, %v781_v27  ;;  %694 = vset.pattern.permute.xlu0 %v713_v26  ;;  %693 = vset.pattern.permute.xlu1 %v713_v26 }
 0x181   : > { %vm295_vm11 = vcmp.eq.f32.partialorder %v758_v11, %v294_v28  ;;  %vm500_vm15 = vcmp.eq.f32.partialorder %v758_v11, %v499_v50 }
 0x182   : > { %v298_v31 = vsel %vm295_vm11, %v297_v21, 16  ;;  %v785_v32 = vcvt.s32.f32 %v259_v29  ;;  %v426_v49 = vcvt.s32.f32 %v424_v48  ;;  %v260_v21 = vcvt.s32.f32 %v258_v18 }
 0x183   : > { %v299_v33 = vsel %vm291_vm5, %v298_v31, 2147483647 }
 0x184   : > { %262 = vmin.xlane.f32.xlu0 %v785_v32  ;;  %v335_v34 = vpop.xlane.xlu0 %334  ;;  %v301_v35 = vshra.s32 %v299_v33, 16  ;;  %v540_v51 = vpop.xlane.xlu1 %539  ;;  %v300_v56 = vand.u32 65535, %v299_v33 }
 0x185   : > { %vm336_vm13 = vcmp.eq.f32.partialorder %v758_v11, %v335_v34  ;;  %vm541_vm2 = vcmp.eq.f32.partialorder %v758_v11, %v540_v51 }
 0x186   : > { %v339_v36 = vsel %vm336_vm13, %v338_v22, 16  ;;  %v303_v37 = vcvt.s32.f32 %v301_v35  ;;  %v302_v60 = vcvt.s32.f32 %v300_v56  ;;  %v423_v22 = vand.u32 65535, %v422_v44  ;;  %v817_v35 = vld [vmem:[%s874_s2] sm:$0xff] }
 0x187   : > { %v340_v38 = vsel %vm332_vm7, %v339_v36, 2147483647 }
 0x188   : > { %304 = vmin.xlane.f32.xlu1 %v303_v37  ;;  %v376_v40 = vpop.xlane.xlu0 %375  ;;  %v342_v41 = vshra.s32 %v340_v38, 16  ;;  %v502_v52 = vpop.permute.xlu1 %501  ;;  %v341_v61 = vand.u32 65535, %v340_v38  ;;  %v425_v24 = vcvt.s32.f32 %v423_v22 }
 0x189   : > { %vm377_vm14 = vcmp.eq.f32.partialorder %v758_v11, %v376_v40  ;;  %v503_v57 = vsel %vm500_vm15, %v502_v52, 16 }
 0x18a   : > { %v380_v42 = vsel %vm377_vm14, %v379_v23, 16  ;;  %v344_v43 = vcvt.s32.f32 %v342_v41  ;;  %v802_v63 = vsel %vm496_vm4, %v503_v57, 2147483647  ;;  %v343_v7 = vcvt.s32.f32 %v341_v61 }
 0x18b   : > { %v381_v45 = vsel %vm373_vm8, %v380_v42, 2147483647  ;;  %v506_v10 = vshra.s32 %v802_v63, 16  ;;  %v505_v34 = vand.u32 65535, %v802_v63 }
 0x18c   : > { %345 = vmin.xlane.f32.xlu1 %v344_v43  ;;  %v383_v46 = vshra.s32 %v381_v45, 16  ;;  %v458_v53 = vpop.xlane.xlu0 %457  ;;  %v543_v54 = vpop.permute.xlu1 %542  ;;  %v382_v8 = vand.u32 65535, %v381_v45 }
 0x18d   : > { %vm459_vm0 = vcmp.eq.f32.partialorder %v758_v11, %v458_v53  ;;  %v544_v4 = vsel %vm541_vm2, %v543_v54, 16  ;;  %v508_v15 = vcvt.s32.f32 %v506_v10 }
 0x18e   : > { %v385_v47 = vcvt.s32.f32 %v383_v46  ;;  %v545_v12 = vsel %vm537_vm6, %v544_v4, 2147483647  ;;  %v384_v14 = vcvt.s32.f32 %v382_v8 }
 0x18f   : > { %v547_v16 = vshra.s32 %v545_v12, 16  ;;  %v546_v44 = vand.u32 65535, %v545_v12 }
 0x190   : > { %386 = vmin.xlane.f32.xlu1 %v385_v47 }
 0x191   : > { %v549_v19 = vcvt.s32.f32 %v547_v16  ;;  %v548_v54 = vcvt.s32.f32 %v546_v44 }
 0x194   : > { %427 = vmin.xlane.f32.xlu1 %v426_v49 }
 0x19a   : > { %460 = vrot.lane.b32.xlu0 %v745_v3, %s712_s26 }
 0x211   : > { %v796_v55 = vpop.xlane.xlu0 %262 }
 0x212   : > { %vm264_vm5 = vcmp.eq.f32.partialorder %v785_v32, %v796_v55  ;;  %v269_v56 = vcvt.f32.s32 %v796_v55 }
 0x213   : > { %v265_v23 = vsel %vm264_vm5, %v260_v21, inf  ;;  %vm366_vm5 = vcmp.eq.s32.totalorder %v745_v3, 2 }
 0x215   : > { %v305_v58 = vpop.xlane.xlu1 %304  ;;  %v461_v59 = vpop.permute.xlu0 %460 }
 0x216   : > { %v462_v62 = vsel %vm459_vm0, %v461_v59, 16  ;;  %vm306_vm1 = vcmp.eq.f32.partialorder %v303_v37, %v305_v58  ;;  %v311_v27 = vcvt.f32.s32 %v305_v58 }
 0x217   : > { %v463_v0 = vsel %vm455_vm9, %v462_v62, 2147483647  ;;  %v307_v2 = vsel %vm306_vm1, %v302_v60, inf }
 0x218   : > { %308 = vmin.xlane.f32.xlu0 %v307_v2  ;;  %v465_v5 = vshra.s32 %v463_v0, 16  ;;  %v464_v28 = vand.u32 65535, %v463_v0  ;;  %v312_v30 = vshll.u32 %v311_v27, 16  ;;  %v270_v2 = vshll.u32 %v269_v56, 16 }
 0x219   : > { %v346_v6 = vpop.xlane.xlu1 %345 }
 0x21a   : > { %vm347_vm3 = vcmp.eq.f32.partialorder %v344_v43, %v346_v6  ;;  %v467_v9 = vcvt.s32.f32 %v465_v5  ;;  %v352_v31 = vcvt.f32.s32 %v346_v6  ;;  %v466_v38 = vcvt.s32.f32 %v464_v28 }
 0x21b   : > { %v348_v13 = vsel %vm347_vm3, %v343_v7, inf  ;;  %vm284_vm3 = vcmp.eq.s32.totalorder %v745_v3, 0 }
 0x21c   : > { %349 = vmin.xlane.f32.xlu0 %v348_v13  ;;  %468 = vmin.xlane.f32.xlu1 %v467_v9  ;;  %v353_v39 = vshll.u32 %v352_v31, 16 }
 0x21d   : > { %v387_v11 = vpop.xlane.xlu1 %386 }
 0x21e   : > { %vm388_vm4 = vcmp.eq.f32.partialorder %v385_v47, %v387_v11  ;;  %v393_v40 = vcvt.f32.s32 %v387_v11  ;;  %v507_v47 = vcvt.s32.f32 %v505_v34 }
 0x21f   : > { %v389_v17 = vsel %vm388_vm4, %v384_v14, inf  ;;  %vm325_vm4 = vcmp.eq.s32.totalorder %v745_v3, 1 }
 0x220   : > { %390 = vmin.xlane.f32.xlu0 %v389_v17  ;;  %509 = vmin.xlane.f32.xlu1 %v508_v15  ;;  %v394_v48 = vshll.u32 %v393_v40, 16 }
 0x221   : > { %v810_v20 = vpop.xlane.xlu1 %427 }
 0x222   : > { %vm429_vm6 = vcmp.eq.f32.partialorder %v426_v49, %v810_v20  ;;  %v434_v55 = vcvt.f32.s32 %v810_v20 }
 0x223   : > { %v430_v25 = vsel %vm429_vm6, %v425_v24, inf  ;;  %vm407_vm6 = vcmp.eq.s32.totalorder %v745_v3, 3 }
 0x224   : > { %550 = vmin.xlane.f32.xlu1 %v549_v19  ;;  %v435_v13 = vshll.u32 %v434_v55, 16 }
 0x228   : > { %266 = vmin.xlane.f32.xlu1 %v265_v23 }
 0x22c   : > { %431 = vmin.xlane.f32.xlu1 %v430_v25 }
 0x2a5   : > { %v309_v29 = vpop.xlane.xlu0 %308 }
 0x2a6   : > { %v310_v32 = vcvt.f32.s32 %v309_v29 }
 0x2a8   : > { %v313_v33 = vadd.s32 %v312_v30, %v310_v32 }
 0x2a9   : > { %v819_v36 = vpop.xlane.xlu1 %468  ;;  %v350_v37 = vpop.xlane.xlu0 %349 }
 0x2aa   : > { %v351_v41 = vcvt.f32.s32 %v350_v37  ;;  %vm470_vm7 = vcmp.eq.f32.partialorder %v467_v9, %v819_v36  ;;  %vm314_vm8 = vcmp.eq.s32.totalorder %v313_v33, %v817_v35 }
 0x2ab   : > { %v471_v42 = vsel %vm470_vm7, %v466_v38, inf  ;;  %v642_v50 = vsel %vm314_vm8, 1.0, %v705_v1  ;;  %vm448_vm7 = vcmp.eq.s32.totalorder %v745_v3, 4  ;;  %vm489_vm8 = vcmp.eq.s32.totalorder %v745_v3, 5 }
 0x2ac   : > { %v354_v43 = vadd.s32 %v353_v39, %v351_v41  ;;  %472 = vmin.xlane.f32.xlu1 %v471_v42  ;;  %v317_v57 = vsel %vm275_vm10, %v642_v50, 0.0 }
 0x2ad   : > { %v823_v45 = vpop.xlane.xlu1 %509  ;;  %v391_v46 = vpop.xlane.xlu0 %390  ;;  %v318_v62 = vrot.slane %v317_v57, 4 }
 0x2ae   : > { %v392_v49 = vcvt.f32.s32 %v391_v46  ;;  %vm511_vm9 = vcmp.eq.f32.partialorder %v508_v15, %v823_v45  ;;  %vm355_vm11 = vcmp.eq.s32.totalorder %v354_v43, %v817_v35  ;;  %v516_v56 = vcvt.f32.s32 %v823_v45 }
 0x2af   : > { %v512_v51 = vsel %vm511_vm9, %v507_v47, inf  ;;  %v643_v58 = vsel %vm355_vm11, 1.0, %v705_v1  ;;  %v319_v8 = vadd.f32 %v318_v62, %v317_v57  ;;  %vm530_vm9 = vcmp.eq.s32.totalorder %v745_v3, 6 }
 0x2b0   : > { %v395_v52 = vadd.s32 %v394_v48, %v392_v49  ;;  %513 = vmin.xlane.f32.xlu0 %v512_v51  ;;  %v358_v4 = vsel %vm275_vm10, %v643_v58, 0.0  ;;  %v475_v51 = vcvt.f32.s32 %v819_v36 }
 0x2b1   : > { %v828_v53 = vpop.xlane.xlu1 %550  ;;  %v359_v9 = vrot.slane %v358_v4, 4  ;;  %v320_v21 = vrot.slane %v319_v8, 2 }
 0x2b2   : > { %vm396_vm12 = vcmp.eq.s32.totalorder %v395_v52, %v817_v35  ;;  %vm552_vm13 = vcmp.eq.f32.partialorder %v549_v19, %v828_v53 }
 0x2b3   : > { %v644_v59 = vsel %vm396_vm12, 1.0, %v705_v1  ;;  %v553_v60 = vsel %vm552_vm13, %v548_v54, inf  ;;  %v360_v18 = vadd.f32 %v359_v9, %v358_v4  ;;  %v321_v28 = vadd.f32 %v320_v21, %v319_v8 }
 0x2b4   : > { %v399_v61 = vsel %vm275_vm10, %v644_v59, 0.0  ;;  %554 = vmin.xlane.f32.xlu1 %v553_v60  ;;  %v476_v54 = vshll.u32 %v475_v51, 16  ;;  %v517_v60 = vshll.u32 %v516_v56, 16 }
 0x2b5   : > { %v400_v63 = vrot.slane %v399_v61, 4  ;;  %v267_v0 = vpop.xlane.xlu1 %266  ;;  %v361_v29 = vrot.slane %v360_v18, 2  ;;  %v322_v34 = vrot.slane %v321_v28, 1 }
 0x2b6   : > { %v268_v5 = vcvt.f32.s32 %v267_v0 }
 0x2b7   : > { %v401_v6 = vadd.f32 %v400_v63, %v399_v61  ;;  %v362_v37 = vadd.f32 %v361_v29, %v360_v18  ;;  %v323_v41 = vadd.f32 %v322_v34, %v321_v28  ;;  %v557_v61 = vcvt.f32.s32 %v828_v53 }
 0x2b8   : > { %v271_v7 = vadd.s32 %v270_v2, %v268_v5 }
 0x2b9   : > { %v432_v10 = vpop.xlane.xlu1 %431  ;;  %v402_v12 = vrot.slane %v401_v6, 2  ;;  %v363_v42 = vrot.slane %v362_v37, 1  ;;  %v324_v44 = vmul.f32 0.125, %v323_v41  ;;  %v558_v4 = vshll.u32 %v557_v61, 16 }
 0x2ba   : > { %vm272_vm14 = vcmp.eq.s32.totalorder %v271_v7, %v817_v35  ;;  %v433_v11 = vcvt.f32.s32 %v432_v10 }
 0x2bb   : > { %v641_v14 = vsel %vm272_vm14, 1.0, %v705_v1  ;;  %v403_v15 = vadd.f32 %v402_v12, %v401_v6  ;;  %v364_v46 = vadd.f32 %v363_v42, %v362_v37 }
 0x2bc   : > { %v276_v16 = vsel %vm275_vm10, %v641_v14, 0.0  ;;  %v436_v17 = vadd.s32 %v435_v13, %v433_v11 }
 0x2bd   : > { %v277_v19 = vrot.slane %v276_v16, 4  ;;  %v404_v20 = vrot.slane %v403_v15, 1  ;;  %v365_v48 = vmul.f32 0.125, %v364_v46 }
 0x2be   : > { %vm437_vm15 = vcmp.eq.s32.totalorder %v436_v17, %v817_v35 }
 0x2bf   : > { %v278_v22 = vadd.f32 %v277_v19, %v276_v16  ;;  %v645_v23 = vsel %vm437_vm15, 1.0, %v705_v1  ;;  %v405_v25 = vadd.f32 %v404_v20, %v403_v15 }
 0x2c0   : > { %v440_v24 = vsel %vm275_vm10, %v645_v23, 0.0 }
 0x2c1   : > { %v441_v26 = vrot.slane %v440_v24, 4  ;;  %v279_v27 = vrot.slane %v278_v22, 2  ;;  %v406_v32 = vmul.f32 0.125, %v405_v25 }
 0x2c3   : > { %v442_v30 = vadd.f32 %v441_v26, %v440_v24  ;;  %v280_v31 = vadd.f32 %v279_v27, %v278_v22 }
 0x2c5   : > { %v281_v33 = vrot.slane %v280_v31, 1  ;;  %v443_v38 = vrot.slane %v442_v30, 2 }
 0x2c6   : > { %410 = vperm.xlu0 %694, %v406_v32  }
 0x2c7   : > { %v282_v39 = vadd.f32 %v281_v33, %v280_v31  ;;  %v444_v43 = vadd.f32 %v443_v38, %v442_v30 }
 0x2c9   : > { %v283_v40 = vmul.f32 0.125, %v282_v39  ;;  %v445_v47 = vrot.slane %v444_v43, 1 }
 0x2cb   : > { %287 = vperm.xlu1 %693, %v283_v40   ;;  %v446_v49 = vadd.f32 %v445_v47, %v444_v43 }
 0x2cd   : > { %v447_v50 = vmul.f32 0.125, %v446_v49 }
 0x2cf   : > { %328 = vperm.xlu1 %693, %v324_v44  }
 0x2d3   : > { %369 = vperm.xlu1 %693, %v365_v48  }
 0x2d7   : > { %451 = vperm.xlu1 %693, %v447_v50  }
 0x339   : > { %v473_v52 = vpop.xlane.xlu1 %472 }
 0x33a   : > { %v474_v57 = vcvt.f32.s32 %v473_v52 }
 0x33c   : > { %v477_v58 = vadd.s32 %v476_v54, %v474_v57 }
 0x33d   : > { %v514_v59 = vpop.xlane.xlu0 %513 }
 0x33e   : > { %vm478_vm0 = vcmp.eq.s32.totalorder %v477_v58, %v817_v35  ;;  %v515_v62 = vcvt.f32.s32 %v514_v59 }
 0x33f   : > { %v646_v63 = vsel %vm478_vm0, 1.0, %v705_v1 }
 0x340   : > { %v481_v0 = vsel %vm275_vm10, %v646_v63, 0.0  ;;  %v518_v2 = vadd.s32 %v517_v60, %v515_v62 }
 0x341   : > { %v482_v55 = vrot.slane %v481_v0, 4  ;;  %v555_v36 = vpop.xlane.xlu1 %554 }
 0x342   : > { %vm519_vm1 = vcmp.eq.s32.totalorder %v518_v2, %v817_v35  ;;  %v556_v45 = vcvt.f32.s32 %v555_v36 }
 0x343   : > { %v483_v5 = vadd.f32 %v482_v55, %v481_v0  ;;  %v647_v6 = vsel %vm519_vm1, 1.0, %v705_v1 }
 0x344   : > { %v522_v7 = vsel %vm275_vm10, %v647_v6, 0.0  ;;  %v559_v53 = vadd.s32 %v558_v4, %v556_v45 }
 0x345   : > { %v523_v8 = vrot.slane %v522_v7, 4  ;;  %v484_v9 = vrot.slane %v483_v5, 2  ;;  %v411_v30 = vpop.permute.xlu0 %410 }
 0x346   : > { %vm560_vm2 = vcmp.eq.s32.totalorder %v559_v53, %v817_v35 }
 0x347   : > { %v524_v10 = vadd.f32 %v523_v8, %v522_v7  ;;  %v648_v12 = vsel %vm560_vm2, 1.0, %v705_v1  ;;  %v485_v13 = vadd.f32 %v484_v9, %v483_v5 }
 0x348   : > { %v563_v11 = vsel %vm275_vm10, %v648_v12, 0.0  ;;  %vm571_vm10 = vcmp.eq.s32.totalorder %v745_v3, 7 }
 0x349   : > { %v564_v14 = vrot.slane %v563_v11, 4  ;;  %v486_v15 = vrot.slane %v485_v13, 1  ;;  %v525_v16 = vrot.slane %v524_v10, 2 }
 0x34a   : > { %v288_v27 = vpop.permute.xlu1 %287 }
 0x34b   : > { %v565_v17 = vadd.f32 %v564_v14, %v563_v11  ;;  %v487_v18 = vadd.f32 %v486_v15, %v485_v13  ;;  %v526_v19 = vadd.f32 %v525_v16, %v524_v10  ;;  %v290_v31 = vsel %vm284_vm3, %v288_v27, 0.0 }
 0x34d   : > { %v488_v20 = vmul.f32 0.125, %v487_v18  ;;  %v527_v21 = vrot.slane %v526_v19, 1  ;;  %v566_v22 = vrot.slane %v565_v17, 2 }
 0x34e   : > { %v329_v28 = vpop.permute.xlu1 %328 }
 0x34f   : > { %492 = vperm.xlu0 %694, %v488_v20   ;;  %v528_v23 = vadd.f32 %v527_v21, %v526_v19  ;;  %v567_v24 = vadd.f32 %v566_v22, %v565_v17  ;;  %v331_v32 = vsel %vm325_vm4, %v329_v28, %v290_v31 }
 0x351   : > { %v529_v25 = vmul.f32 0.125, %v528_v23  ;;  %v568_v35 = vrot.slane %v567_v24, 1 }
 0x352   : > { %v370_v29 = vpop.permute.xlu1 %369 }
 0x353   : > { %533 = vperm.xlu1 %693, %v529_v25   ;;  %v569_v26 = vadd.f32 %v568_v35, %v567_v24  ;;  %v372_v34 = vsel %vm366_vm5, %v370_v29, %v331_v32 }
 0x354   : > { %v413_v38 = vsel %vm407_vm6, %v411_v30, %v372_v34 }
 0x355   : > { %v570_v1 = vmul.f32 0.125, %v569_v26 }
 0x356   : > { %v452_v33 = vpop.permute.xlu1 %451 }
 0x357   : > { %574 = vperm.xlu0 %694, %v570_v1   ;;  %v454_v40 = vsel %vm448_vm7, %v452_v33, %v413_v38 }
 0x3ce   : > { %v493_v37 = vpop.permute.xlu0 %492 }
 0x3cf   : > { %v495_v41 = vsel %vm489_vm8, %v493_v37, %v454_v40 }
 0x3d2   : > { %v534_v39 = vpop.permute.xlu1 %533 }
 0x3d3   : > { %v536_v42 = vsel %vm530_vm9, %v534_v39, %v495_v41 }
 0x3d6   : > { %v575_v43 = vpop.permute.xlu0 %574 }
 0x3d7   : > { %v577_v44 = vsel %vm571_vm10, %v575_v43, %v536_v42 }
 0x3d8   : > { %578 = vst [vmem:[%s168_s5] sm:$0xff] %v577_v44 }
 0x3d9 PF: > { %s13_s12 = sadd.s32 1, %s701_s12  }
 0x3da   : > { %p10_p4 = scmp.ge.s32.totalorder %s13_s12, 4  }
 0x3dc   :  { %12 = sbr.rel (!%p10_p4) target bundleno = 1 (0x1), region = 62 }

</bundles_post_ra>
